<compile_context>
chip_gen: v5e
topology: v5e:2x2
jax: 0.10.0
libtpu: 0.0.40
codegen_flags: <defaults>
</compile_context>

<pallas_src>
import functools

import jax
import jax.numpy as jnp
from jax.experimental import pallas as pl
from jax.experimental.pallas import tpu as pltpu

TEMPERATURE = 0.05
EPS = 1e-12            # F.normalize clamp eps (on the norm)
EPS_SQ = EPS * EPS     # clamp on the squared norm


def _pick_tile(rows: int, max_tile: int) -> int:
    """Largest tile <= max_tile that divides `rows`, else the full extent."""
    if rows <= max_tile:
        return rows
    for t in (512, 256, 128, 64, 32, 16, 8):
        if t <= max_tile and rows % t == 0:
            return t
    return rows  # full-array block is always a legal BlockSpec


def _triplet_kernel(q_ref, pos_ref, *rest, inv_temp, n_pos_tiles, inv_b,
                    mxu_dtype, has_negative, bounded):
    idx = 0
    if has_negative:
        neg_ref = rest[idx]; idx += 1
    out_ref = rest[idx]; idx += 1
    qn_sc = rest[idx]; l_sc = rest[idx + 1]; dsum_sc = rest[idx + 2]; idx += 3
    m_sc = None if bounded else rest[idx]

    qi = pl.program_id(0)       # query-tile index ("parallel")
    c = pl.program_id(1)        # candidate-tile index ("arbitrary")
    inv_t = jnp.float32(inv_temp)

    def _normalize(x):
        # matches torch.nn.functional.normalize(p=2, dim=-1, eps=1e-12)
        x = x.astype(jnp.float32)
        ssq = jnp.sum(x * x, axis=-1, keepdims=True)
        return x * jax.lax.rsqrt(jnp.maximum(ssq, EPS_SQ))

    @pl.when(c == 0)
    def _init():
        # Normalize this query tile once, fold 1/temperature in, store in MXU dtype.
        qn_sc[...] = (_normalize(q_ref[...]) * inv_t).astype(qn_sc.dtype)
        l_sc[...] = jnp.zeros_like(l_sc)
        dsum_sc[...] = jnp.zeros_like(dsum_sc)
        if not bounded:
            m_sc[...] = jnp.full_like(m_sc, -jnp.inf)

    def _accumulate(cn):
        # cn: (Tc, D) normalized candidate tile in mxu_dtype
        scores = jax.lax.dot_general(
            qn_sc[...], cn,
            dimension_numbers=(((1,), (1,)), ((), ())),
            preferred_element_type=jnp.float32)                    # (tq, Tc)
        if bounded:
            # |qn_i . cn_j| <= 1  =>  scores <= 1/T: shift by the static bound
            # instead of a running max (no per-step lane max / rescale pass).
            l_sc[...] += jnp.sum(jnp.exp(scores - inv_t), axis=-1, keepdims=True)
        else:
            m_prev = m_sc[...]                                     # (tq, 1)
            m_new = jnp.maximum(m_prev, jnp.max(scores, axis=-1, keepdims=True))
            l_sc[...] = jnp.exp(m_prev - m_new) * l_sc[...] + jnp.sum(
                jnp.exp(scores - m_new), axis=-1, keepdims=True)
            m_sc[...] = m_new

    @pl.when(c < n_pos_tiles)
    def _positive_tile():
        pn = _normalize(pos_ref[...]).astype(mxu_dtype)            # (tq, D)
        _accumulate(pn)

        # Positive tile size == query tile size, so the diagonal (label) scores
        # of this query tile come exactly from candidate tile c == qi.
        @pl.when(c == qi)
        def _diag():
            prod = qn_sc[...].astype(jnp.float32) * pn.astype(jnp.float32)
            row = jnp.sum(prod, axis=-1, keepdims=True)            # (tq, 1)
            dsum_sc[...] += jnp.sum(row, axis=0, keepdims=True)    # (1, 1)

    if has_negative:
        @pl.when(c >= n_pos_tiles)
        def _negative_tile():
            _accumulate(_normalize(neg_ref[...]).astype(mxu_dtype))

    @pl.when(c == pl.num_programs(1) - 1)
    def _finalize():
        if bounded:
            lse = jnp.log(l_sc[...]) + inv_t                       # (tq, 1)
        else:
            lse = m_sc[...] + jnp.log(l_sc[...])
        total = jnp.sum(lse, axis=0, keepdims=True) - dsum_sc[...]  # (1, 1)
        out_ref[...] = (total * jnp.float32(inv_b)).reshape(out_ref.shape)


def triplet_ranking_loss(query, positive, negative=None,
                         temperature=TEMPERATURE, max_candidate_tile=512):
    """Pallas implementation of TripletRankingLoss.forward (in-batch negatives)."""
    b, d = query.shape
    assert positive.shape == (b, d)
    has_negative = negative is not None
    if has_negative:
        bn, dn = negative.shape
        assert dn == d
    else:
        bn = 0

    inv_temp = 1.0 / float(temperature)
    # Shift-by-bound LSE: exp arg in [-2/T, 0]; safe (no over/underflow of the
    # whole sum) while 2/T stays well under ~87.  Otherwise use online softmax.
    bounded = inv_temp <= 40.0
    mxu_dtype = jnp.bfloat16 if query.dtype == jnp.bfloat16 else jnp.float32

    # Generation-aware VMEM budget (v5e/v6e: 128 MiB, v7x: 64 MiB physical).
    try:
        info = pltpu.get_tpu_info()
        vmem_cap = int(getattr(info, "vmem_capacity_bytes", 64 << 20))
    except Exception:  # pragma: no cover - CPU / interpret fallback
        vmem_cap = 64 << 20
    budget = max(vmem_cap - (8 << 20), 16 << 20)

    in_itemsize = jnp.dtype(query.dtype).itemsize
    mxu_itemsize = jnp.dtype(mxu_dtype).itemsize

    def _est_bytes(tq, tn):
        rows = -(-tq // 8) * 8                    # sublane padding of (tq, 1)
        tmax = max(tq, tn, 1)
        e = 2 * tq * d * in_itemsize              # query double buffer
        e += 2 * tq * d * in_itemsize             # positive double buffer
        if has_negative:
            e += 2 * tn * d * in_itemsize         # negative double buffer
        e += 2 * 8 * 128 * 4                      # padded (1,1,1) output buffers
        e += tq * d * mxu_itemsize                # normalized-query scratch
        e += rows * 128 * 4                       # l scratch (lane padded)
        e += 8 * 128 * 4                          # diag-sum scratch (padded)
        if not bounded:
            e += rows * 128 * 4                   # running-max scratch
        e += 2 * tq * tmax * 4                    # scores / exp temporaries
        e += tmax * d * 4 + tq * d * 4            # f32 normalization temporaries
        return e

    max_tile = int(max_candidate_tile)
    while True:
        tq = _pick_tile(b, max_tile)              # query tile == positive tile
        tn = _pick_tile(bn, max_tile) if has_negative else 0
        est = _est_bytes(tq, tn)
        if est <= budget or max_tile <= 8:
            break
        max_tile //= 2

    n_q_tiles = b // tq
    n_pos_tiles = n_q_tiles
    n_neg_tiles = (bn // tn) if has_negative else 0
    n_cand_tiles = n_pos_tiles + n_neg_tiles

    in_specs = [
        # query: one tile per outer grid index, constant across the candidate sweep
        pl.BlockSpec((tq, d), lambda qi, c: (qi, 0)),
        # positive tiles for c < n_pos_tiles, clamped afterwards (no re-DMA)
        pl.BlockSpec((tq, d),
                     lambda qi, c: (jnp.minimum(c, n_pos_tiles - 1), 0)),
    ]
    args = [query, positive]
    if has_negative:
        in_specs.append(
            pl.BlockSpec((tn, d),
                         lambda qi, c: (jnp.maximum(c - n_pos_tiles, 0), 0)))
        args.append(negative)

    scratch_shapes = [
        pltpu.VMEM((tq, d), mxu_dtype),     # normalized (and 1/T-scaled) query tile
        pltpu.VMEM((tq, 1), jnp.float32),   # running exp-sum
        pltpu.VMEM((1, 1), jnp.float32),    # running diagonal (label) sum
    ]
    if not bounded:
        scratch_shapes.append(pltpu.VMEM((tq, 1), jnp.float32))  # running max

    kernel = functools.partial(
        _triplet_kernel, inv_temp=inv_temp, n_pos_tiles=n_pos_tiles,
        inv_b=1.0 / b, mxu_dtype=mxu_dtype, has_negative=has_negative,
        bounded=bounded)

    vmem_limit = max(est * 3 // 2 + (4 << 20), 32 << 20)
    vmem_limit = int(min(max(vmem_limit, est + (2 << 20)), budget, vmem_cap))

    partials = pl.pallas_call(
        kernel,
        out_shape=jax.ShapeDtypeStruct((n_q_tiles, 1, 1), jnp.float32),
        grid_spec=pltpu.PrefetchScalarGridSpec(
            num_scalar_prefetch=0,
            grid=(n_q_tiles, n_cand_tiles),
            in_specs=in_specs,
            out_specs=pl.BlockSpec((1, 1, 1), lambda qi, c: (qi, 0, 0)),
            scratch_shapes=scratch_shapes),
        compiler_params=pltpu.CompilerParams(
            dimension_semantics=("parallel", "arbitrary"),
            vmem_limit_bytes=vmem_limit),
    )(*args)
    return jnp.sum(partials)


def _reference(query, positive, negative=None, temperature=TEMPERATURE):
    def norm(x):
        x = x.astype(jnp.float32)
        n = jnp.sqrt(jnp.sum(x * x, axis=-1, keepdims=True))
        return x / jnp.maximum(n, EPS)

    q = norm(query)
    cand = norm(positive)
    if negative is not None:
        cand = jnp.concatenate([cand, norm(negative)], axis=0)
    scores = (q @ cand.T) / temperature
    logp = jax.nn.log_softmax(scores, axis=-1)
    idx = jnp.arange(q.shape[0])
    return -jnp.mean(logp[idx, idx])


if __name__ == "__main__":
    key = jax.random.PRNGKey(0)
    kq, kp, kn = jax.random.split(key, 3)
    D = 128

    # Case 1: default temperature, several candidate tiles, single query tile.
    B, Bn = 8, 16
    q = jax.random.normal(kq, (B, D), dtype=jnp.float32)
    p = jax.random.normal(kp, (B, D), dtype=jnp.float32)
    n = jax.random.normal(kn, (Bn, D), dtype=jnp.float32)
    out = jax.block_until_ready(triplet_ranking_loss(q, p, n, max_candidate_tile=8))
    ref = _reference(q, p, n)
    assert jnp.allclose(out, ref, rtol=1e-4, atol=1e-4), (out, ref)

    # Case 2: multiple query tiles (exercises the "parallel" query grid axis
    # and the diag-tile alignment) plus explicit negatives.
    B2, Bn2 = 16, 24
    q2 = jax.random.normal(kq, (B2, D), dtype=jnp.float32)
    p2 = jax.random.normal(kp, (B2, D), dtype=jnp.float32)
    n2 = jax.random.normal(kn, (Bn2, D), dtype=jnp.float32)
    out2 = jax.block_until_ready(triplet_ranking_loss(q2, p2, n2, max_candidate_tile=8))
    ref2 = _reference(q2, p2, n2)
    assert jnp.allclose(out2, ref2, rtol=1e-4, atol=1e-4), (out2, ref2)

    # Case 3: no explicit negatives (pure in-batch negatives).
    out3 = jax.block_until_ready(triplet_ranking_loss(q, p))
    ref3 = _reference(q, p, None)
    assert jnp.allclose(out3, ref3, rtol=1e-4, atol=1e-4), (out3, ref3)

    # Case 4: very small temperature -> online-softmax fallback path.
    out4 = jax.block_until_ready(
        triplet_ranking_loss(q, p, n, temperature=0.01, max_candidate_tile=8))
    ref4 = _reference(q, p, n, temperature=0.01)
    assert jnp.allclose(out4, ref4, rtol=1e-4, atol=1e-4), (out4, ref4)

    print("KERNEL_OK")
</pallas_src>

<mosaic_0001>
module attributes {stable_mosaic.version = 11 : i64} {
  func.func @_triplet_kernel(%arg0: i32, %arg1: i32, %arg2: memref<8x128xf32, #tpu.memory_space<vmem>>, %arg3: memref<8x128xf32, #tpu.memory_space<vmem>>, %arg4: memref<8x128xf32, #tpu.memory_space<vmem>>, %arg5: memref<1x1x1xf32, #tpu.memory_space<vmem>>, %arg6: memref<8x128xf32, #tpu.memory_space<vmem>>, %arg7: memref<8x1xf32, #tpu.memory_space<vmem>>, %arg8: memref<1x1xf32, #tpu.memory_space<vmem>>) attributes {dimension_semantics = [#tpu.dimension_semantics<parallel>, #tpu.dimension_semantics<arbitrary>], iteration_bounds = array<i64: 1, 3>, scalar_prefetch = 0 : i64, scratch_operands = 3 : i64, tpu.core_type = #tpu.core_type<tc>, window_params = [{transform_indices = @transform_0, window_bounds = array<i64: 8, 128>}, {transform_indices = @transform_1, window_bounds = array<i64: 8, 128>}, {transform_indices = @transform_2, window_bounds = array<i64: 8, 128>}, {transform_indices = @transform_3, window_bounds = array<i64: 1, 1, 1>}]} {
    %c0_i32 = arith.constant 0 : i32
    %0 = arith.cmpi eq, %arg1, %c0_i32 : i32
    %1 = arith.extui %0 : i1 to i32
    %cst = arith.constant 2.000000e+01 : f32
    %c0_i32_0 = arith.constant 0 : i32
    %2 = arith.cmpi ne, %1, %c0_i32_0 : i32
    scf.if %2 {
      %c0 = arith.constant 0 : index
      %c0_8 = arith.constant 0 : index
      %12 = vector.load %arg2[%c0, %c0_8] : memref<8x128xf32, #tpu.memory_space<vmem>>, vector<8x128xf32>
      %13 = arith.mulf %12, %12 : vector<8x128xf32>
      %cst_9 = arith.constant dense<0.000000e+00> : vector<8xf32>
      %14 = vector.multi_reduction <add>, %13, %cst_9 [1] : vector<8x128xf32> to vector<8xf32>
      %15 = vector.shape_cast %14 : vector<8xf32> to vector<8x1xf32>
      %cst_10 = arith.constant 1.000000e-24 : f32
      %16 = vector.broadcast %cst_10 : f32 to vector<8x1xf32>
      %17 = arith.maximumf %15, %16 : vector<8x1xf32>
      %18 = math.rsqrt %17 : vector<8x1xf32>
      %19 = vector.broadcast %18 : vector<8x1xf32> to vector<8x128xf32>
      %20 = arith.mulf %12, %19 : vector<8x128xf32>
      %21 = vector.broadcast %cst : f32 to vector<8x128xf32>
      %22 = arith.mulf %20, %21 : vector<8x128xf32>
      %c0_11 = arith.constant 0 : index
      %c0_12 = arith.constant 0 : index
      %23 = vector.load %arg6[%c0_11, %c0_12] : memref<8x128xf32, #tpu.memory_space<vmem>>, vector<8x128xf32>
      tpu.vector_store %arg6[%c0_11, %c0_12], %22 {strides = array<i32>} : memref<8x128xf32, #tpu.memory_space<vmem>>, vector<8x128xf32>,
      %cst_13 = arith.constant 0.000000e+00 : f32
      %24 = vector.broadcast %cst_13 : f32 to vector<8x1xf32>
      %c0_14 = arith.constant 0 : index
      %c0_15 = arith.constant 0 : index
      %25 = vector.load %arg7[%c0_14, %c0_15] : memref<8x1xf32, #tpu.memory_space<vmem>>, vector<8x1xf32>
      tpu.vector_store %arg7[%c0_14, %c0_15], %24 {strides = array<i32>} : memref<8x1xf32, #tpu.memory_space<vmem>>, vector<8x1xf32>,
      %cst_16 = arith.constant 0.000000e+00 : f32
      %26 = vector.broadcast %cst_16 : f32 to vector<1x1xf32>
      %c0_17 = arith.constant 0 : index
      %c0_18 = arith.constant 0 : index
      %27 = vector.load %arg8[%c0_17, %c0_18] : memref<1x1xf32, #tpu.memory_space<vmem>>, vector<1x1xf32>
      tpu.vector_store %arg8[%c0_17, %c0_18], %26 {strides = array<i32>} : memref<1x1xf32, #tpu.memory_space<vmem>>, vector<1x1xf32>,
    } else {
    }
    %c1_i32 = arith.constant 1 : i32
    %3 = arith.cmpi slt, %arg1, %c1_i32 : i32
    %4 = arith.extui %3 : i1 to i32
    %cst_1 = arith.constant 2.000000e+01 : f32
    %c0_i32_2 = arith.constant 0 : i32
    %5 = arith.cmpi ne, %4, %c0_i32_2 : i32
    scf.if %5 {
      %c0 = arith.constant 0 : index
      %c0_8 = arith.constant 0 : index
      %12 = vector.load %arg3[%c0, %c0_8] : memref<8x128xf32, #tpu.memory_space<vmem>>, vector<8x128xf32>
      %13 = arith.mulf %12, %12 : vector<8x128xf32>
      %cst_9 = arith.constant dense<0.000000e+00> : vector<8xf32>
      %14 = vector.multi_reduction <add>, %13, %cst_9 [1] : vector<8x128xf32> to vector<8xf32>
      %15 = vector.shape_cast %14 : vector<8xf32> to vector<8x1xf32>
      %cst_10 = arith.constant 1.000000e-24 : f32
      %16 = vector.broadcast %cst_10 : f32 to vector<8x1xf32>
      %17 = arith.maximumf %15, %16 : vector<8x1xf32>
      %18 = math.rsqrt %17 : vector<8x1xf32>
      %19 = vector.broadcast %18 : vector<8x1xf32> to vector<8x128xf32>
      %20 = arith.mulf %12, %19 : vector<8x128xf32>
      %c0_11 = arith.constant 0 : index
      %c0_12 = arith.constant 0 : index
      %21 = vector.load %arg6[%c0_11, %c0_12] : memref<8x128xf32, #tpu.memory_space<vmem>>, vector<8x128xf32>
      %cst_13 = arith.constant dense<0.000000e+00> : vector<8x8xf32>
      %22 = tpu.matmul %21, %20, %cst_13 {dimension_numbers = #tpu.dot_dimension_numbers<[1], [1], [0], [0], [0, 0, 1, 0], [], []>} : vector<8x128xf32>, vector<8x128xf32>, vector<8x8xf32> -> vector<8x8xf32>
      %c0_14 = arith.constant 0 : index
      %c0_15 = arith.constant 0 : index
      %23 = vector.load %arg7[%c0_14, %c0_15] : memref<8x1xf32, #tpu.memory_space<vmem>>, vector<8x1xf32>
      %24 = vector.broadcast %cst_1 : f32 to vector<8x8xf32>
      %25 = arith.subf %22, %24 : vector<8x8xf32>
      %26 = math.exp %25 : vector<8x8xf32>
      %cst_16 = arith.constant dense<0.000000e+00> : vector<8xf32>
      %27 = vector.multi_reduction <add>, %26, %cst_16 [1] : vector<8x8xf32> to vector<8xf32>
      %28 = vector.shape_cast %27 : vector<8xf32> to vector<8x1xf32>
      %29 = arith.addf %23, %28 : vector<8x1xf32>
      %c0_17 = arith.constant 0 : index
      %c0_18 = arith.constant 0 : index
      %30 = vector.load %arg7[%c0_17, %c0_18] : memref<8x1xf32, #tpu.memory_space<vmem>>, vector<8x1xf32>
      tpu.vector_store %arg7[%c0_17, %c0_18], %29 {strides = array<i32>} : memref<8x1xf32, #tpu.memory_space<vmem>>, vector<8x1xf32>,
      %31 = arith.cmpi eq, %arg1, %arg0 : i32
      %32 = arith.extui %31 : i1 to i32
      %c0_i32_19 = arith.constant 0 : i32
      %33 = arith.cmpi ne, %32, %c0_i32_19 : i32
      scf.if %33 {
        %c0_20 = arith.constant 0 : index
        %c0_21 = arith.constant 0 : index
        %34 = vector.load %arg6[%c0_20, %c0_21] : memref<8x128xf32, #tpu.memory_space<vmem>>, vector<8x128xf32>
        %35 = arith.mulf %34, %20 : vector<8x128xf32>
        %cst_22 = arith.constant dense<0.000000e+00> : vector<8xf32>
        %36 = vector.multi_reduction <add>, %35, %cst_22 [1] : vector<8x128xf32> to vector<8xf32>
        %37 = vector.shape_cast %36 : vector<8xf32> to vector<8x1xf32>
        %c0_23 = arith.constant 0 : index
        %c0_24 = arith.constant 0 : index
        %38 = vector.load %arg8[%c0_23, %c0_24] : memref<1x1xf32, #tpu.memory_space<vmem>>, vector<1x1xf32>
        %cst_25 = arith.constant dense<0.000000e+00> : vector<1xf32>
        %39 = vector.multi_reduction <add>, %37, %cst_25 [0] : vector<8x1xf32> to vector<1xf32>
        %40 = vector.shape_cast %39 : vector<1xf32> to vector<1x1xf32>
        %41 = arith.addf %38, %40 : vector<1x1xf32>
        %c0_26 = arith.constant 0 : index
        %c0_27 = arith.constant 0 : index
        %42 = vector.load %arg8[%c0_26, %c0_27] : memref<1x1xf32, #tpu.memory_space<vmem>>, vector<1x1xf32>
        tpu.vector_store %arg8[%c0_26, %c0_27], %41 {strides = array<i32>} : memref<1x1xf32, #tpu.memory_space<vmem>>, vector<1x1xf32>,
      } else {
      }
    } else {
    }
    %c1_i32_3 = arith.constant 1 : i32
    %6 = arith.cmpi sge, %arg1, %c1_i32_3 : i32
    %7 = arith.extui %6 : i1 to i32
    %cst_4 = arith.constant 2.000000e+01 : f32
    %c0_i32_5 = arith.constant 0 : i32
    %8 = arith.cmpi ne, %7, %c0_i32_5 : i32
    scf.if %8 {
      %c0 = arith.constant 0 : index
      %c0_8 = arith.constant 0 : index
      %12 = vector.load %arg4[%c0, %c0_8] : memref<8x128xf32, #tpu.memory_space<vmem>>, vector<8x128xf32>
      %13 = arith.mulf %12, %12 : vector<8x128xf32>
      %cst_9 = arith.constant dense<0.000000e+00> : vector<8xf32>
      %14 = vector.multi_reduction <add>, %13, %cst_9 [1] : vector<8x128xf32> to vector<8xf32>
      %15 = vector.shape_cast %14 : vector<8xf32> to vector<8x1xf32>
      %cst_10 = arith.constant 1.000000e-24 : f32
      %16 = vector.broadcast %cst_10 : f32 to vector<8x1xf32>
      %17 = arith.maximumf %15, %16 : vector<8x1xf32>
      %18 = math.rsqrt %17 : vector<8x1xf32>
      %19 = vector.broadcast %18 : vector<8x1xf32> to vector<8x128xf32>
      %20 = arith.mulf %12, %19 : vector<8x128xf32>
      %c0_11 = arith.constant 0 : index
      %c0_12 = arith.constant 0 : index
      %21 = vector.load %arg6[%c0_11, %c0_12] : memref<8x128xf32, #tpu.memory_space<vmem>>, vector<8x128xf32>
      %cst_13 = arith.constant dense<0.000000e+00> : vector<8x8xf32>
      %22 = tpu.matmul %21, %20, %cst_13 {dimension_numbers = #tpu.dot_dimension_numbers<[1], [1], [0], [0], [0, 0, 1, 0], [], []>} : vector<8x128xf32>, vector<8x128xf32>, vector<8x8xf32> -> vector<8x8xf32>
      %c0_14 = arith.constant 0 : index
      %c0_15 = arith.constant 0 : index
      %23 = vector.load %arg7[%c0_14, %c0_15] : memref<8x1xf32, #tpu.memory_space<vmem>>, vector<8x1xf32>
      %24 = vector.broadcast %cst_4 : f32 to vector<8x8xf32>
      %25 = arith.subf %22, %24 : vector<8x8xf32>
      %26 = math.exp %25 : vector<8x8xf32>
      %cst_16 = arith.constant dense<0.000000e+00> : vector<8xf32>
      %27 = vector.multi_reduction <add>, %26, %cst_16 [1] : vector<8x8xf32> to vector<8xf32>
      %28 = vector.shape_cast %27 : vector<8xf32> to vector<8x1xf32>
      %29 = arith.addf %23, %28 : vector<8x1xf32>
      %c0_17 = arith.constant 0 : index
      %c0_18 = arith.constant 0 : index
      %30 = vector.load %arg7[%c0_17, %c0_18] : memref<8x1xf32, #tpu.memory_space<vmem>>, vector<8x1xf32>
      tpu.vector_store %arg7[%c0_17, %c0_18], %29 {strides = array<i32>} : memref<8x1xf32, #tpu.memory_space<vmem>>, vector<8x1xf32>,
    } else {
    }
    %c2_i32 = arith.constant 2 : i32
    %9 = arith.cmpi eq, %arg1, %c2_i32 : i32
    %10 = arith.extui %9 : i1 to i32
    %cst_6 = arith.constant 2.000000e+01 : f32
    %c0_i32_7 = arith.constant 0 : i32
    %11 = arith.cmpi ne, %10, %c0_i32_7 : i32
    scf.if %11 {
      %c0 = arith.constant 0 : index
      %c0_8 = arith.constant 0 : index
      %12 = vector.load %arg7[%c0, %c0_8] : memref<8x1xf32, #tpu.memory_space<vmem>>, vector<8x1xf32>
      %13 = math.log %12 : vector<8x1xf32>
      %14 = vector.broadcast %cst_6 : f32 to vector<8x1xf32>
      %15 = arith.addf %13, %14 : vector<8x1xf32>
      %cst_9 = arith.constant dense<0.000000e+00> : vector<1xf32>
      %16 = vector.multi_reduction <add>, %15, %cst_9 [0] : vector<8x1xf32> to vector<1xf32>
      %17 = vector.shape_cast %16 : vector<1xf32> to vector<1x1xf32>
      %c0_10 = arith.constant 0 : index
      %c0_11 = arith.constant 0 : index
      %18 = vector.load %arg8[%c0_10, %c0_11] : memref<1x1xf32, #tpu.memory_space<vmem>>, vector<1x1xf32>
      %19 = arith.subf %17, %18 : vector<1x1xf32>
      %cst_12 = arith.constant 1.250000e-01 : f32
      %20 = vector.broadcast %cst_12 : f32 to vector<1x1xf32>
      %21 = arith.mulf %19, %20 : vector<1x1xf32>
      %22 = vector.shape_cast %21 : vector<1x1xf32> to vector<1x1x1xf32>
      %c0_13 = arith.constant 0 : index
      %c0_14 = arith.constant 0 : index
      %c0_15 = arith.constant 0 : index
      %23 = vector.load %arg5[%c0_13, %c0_14, %c0_15] : memref<1x1x1xf32, #tpu.memory_space<vmem>>, vector<1x1x1xf32>
      tpu.vector_store %arg5[%c0_13, %c0_14, %c0_15], %22 {strides = array<i32>} : memref<1x1x1xf32, #tpu.memory_space<vmem>>, vector<1x1x1xf32>,
    } else {
    }
    return
  }
  func.func @transform_0(%arg0: i32, %arg1: i32) -> (i32, i32) {
    %c0_i32 = arith.constant 0 : i32
    %c0_i32_0 = arith.constant 0 : i32
    return %arg0, %c0_i32 : i32, i32
  }
  func.func @transform_1(%arg0: i32, %arg1: i32) -> (i32, i32) {
    %c0_i32 = arith.constant 0 : i32
    %0 = arith.minsi %arg1, %c0_i32 : i32
    %c0_i32_0 = arith.constant 0 : i32
    %c0_i32_1 = arith.constant 0 : i32
    return %0, %c0_i32_0 : i32, i32
  }
  func.func @transform_2(%arg0: i32, %arg1: i32) -> (i32, i32) {
    %c1_i32 = arith.constant 1 : i32
    %0 = arith.subi %arg1, %c1_i32 : i32
    %c0_i32 = arith.constant 0 : i32
    %1 = arith.maxsi %0, %c0_i32 : i32
    %c0_i32_0 = arith.constant 0 : i32
    %c0_i32_1 = arith.constant 0 : i32
    return %1, %c0_i32_0 : i32, i32
  }
  func.func @transform_3(%arg0: i32, %arg1: i32) -> (i32, i32, i32) {
    %c0_i32 = arith.constant 0 : i32
    %c0_i32_0 = arith.constant 0 : i32
    %c0_i32_1 = arith.constant 0 : i32
    return %arg0, %c0_i32, %c0_i32_0 : i32, i32, i32
  }
}

</mosaic_0001>

<bundles_post_ra>
// kernel: tpu_custom_call.1
= control target key start
LH: loop header
LB: loop body
LE: loop exit
PB: predicated region body
PF: predicated region fallthrough
CT: control target
= control target key end

     0   :  { %8 = vsyncpa [#allocation6], 0  ;;  %s1087_s0 = inlined_call_operand.hbm [shape: f32[8,128], index: 0, kind: input, shape index: {}]   ;;  %s1088_s1 = inlined_call_operand.hbm [shape: f32[8,128], index: 1, kind: input, shape index: {}]   ;;  %s1089_s2 = inlined_call_operand.hbm [shape: f32[16,128], index: 2, kind: input, shape index: {}]   ;;  %s1090_s3 = inlined_call_operand.hbm [shape: f32[1,1,1], index: 3, kind: output, shape index: {}]  }
   0x1   :  { %9 = vsyncpa [#allocation9], 0 }
   0x2   :  { %11 = vsyncpa [#allocation9 + $0x1], 0 }
   0x3   :  { %12 = vsyncpa [#allocation7], 0  ;;  %s912_s12 = smov 0   ;;  %s914_s13 = smov 0  }
   0x4   :  { %s916_s14 = smov 0   ;;  %s918_s15 = smov 0  }
   0x5   :  { %s920_s16 = smov 0   ;;  %s922_s17 = smov 0  }
   0x6   :  { %s924_s18 = smov 0   ;;  %s926_s19 = smov 0  }
   0x7 LB: > { %s27_s20 = sadd.s32 1, %s882_s18  ;;  %p855_p1 = scmp.ne.s32.totalorder %s874_s16, 0  ;;  %s886_s19 = sphi %s926_s19, %s18_s19   ;;  %s882_s18 = sphi %s924_s18, %s1100_s18   ;;  %s878_s17 = sphi %s922_s17, %s1099_s17   ;;  %s874_s16 = sphi %s920_s16, %s1077_s16   ;;  %s870_s15 = sphi %s918_s15, %s1098_s15   ;;  %s866_s14 = sphi %s916_s14, %s1097_s14   ;;  %s862_s13 = sphi %s914_s13, %s1096_s13   ;;  %s858_s12 = sphi %s912_s12, %s1095_s12  }
   0x8   : > { %p28_p0 = scmp.ge.s32.totalorder %s27_s20, 3  ;;  %p75_p2 = scmp.eq.s32.totalorder %s886_s19, 0 }
   0x9   : > { %p80_p3 = scmp.ne.s32.totalorder %s874_s16, %s870_s15  ;;  %p594_p5 = scmp.lt.s32.totalorder %s886_s19, 3 }
   0xa   : > { %s1102_s20 = smov (%p28_p0, %s27_s20), 0  ;;  %p76_p4 = por %p855_p1, %p75_p2 }
   0xb   : > { %s176_s21 = sand.u32 1, %s886_s19   ;;  %s188_s24 = sshll.u32 %s1088_s1, 4  ;;  %s189_s24 = int_to_ptr.hbm [resolvable:$true] %s188_s24 }
   0xc   : > { %s888_s25 = smov [#allocation8]   ;;  %p587_p6 = pnand %p594_p5, %p76_p4 }
   0xd   : > { %s190_s26 = sshll.u32 %s888_s25, 4  ;;  %s968_s27 = scalar_lea.sflag [#allocation9], %s176_s21  ;;  %s191_s26 = int_to_ptr.vmem [resolvable:$true] %s190_s26 }
   0xe   : > { %s685_s28 = sshra.s32 %s189_s24, 4  ;;  %p689_p8 = pneg %p587_p6  ;;  %s686_s28 = int_to_ptr.hbm [resolvable:$true] %s685_s28 }
   0xf   : > { %s687_s29 = scalar_lea.hbm %s686_s28, 8  ;;  %s692_s5 = scalar_lea.hbm %s1088_s1, 8 }
  0x10   : > { %p688_p7 = scmp.ne.s32.totalorder %s686_s28, %s687_s29  ;;  %p694_p11 = scmp.lt.s32.totalorder %s692_s5, %s687_s29 }
  0x12   : > { %p690_p9 = pnand %p689_p8, %p688_p7 }
  0x14   : > { %p691_p10 = pneg %p690_p9 }
  0x16   : > { %p696_p12 = pnand %p694_p11, %p691_p10 }
  0x18   : > { %699 = shalt.err (!%p696_p12)
}
  0x19   : > { %589 = dma.hbm_to_vmem [thread:$0]  (!%p587_p6), %s189_s24, 128, %s191_s26, %s968_s27  }
  0x1a   : > { %s975_s6 = sadd.s32 4294967295, %s886_s19   ;;  %p112_p13 = scmp.ne.s32.totalorder %s862_s13, %s858_s12 }
  0x1b   : > { %p81_p0 = scmp.eq.s32.totalorder %s975_s6, 0  ;;  %p547_p1 = scmp.ge.s32.totalorder %s886_s19, 1 }
  0x1c   : > { %p149_p4 = scmp.lt.s32.totalorder %s886_s19, 4  ;;  %s163_s12 = sshll.u32 %s1087_s0, 4  ;;  %s164_s12 = int_to_ptr.hbm [resolvable:$true] %s163_s12 }
  0x1d   : > { %p987_p7 = por %p81_p0, %p80_p3  ;;  %p993_p6 = por %p112_p13, %p81_p0 }
  0x1e   : > { %p997_p8 = pnand %p547_p1, %p149_p4  ;;  %s889_s15 = smov [#allocation5]  }
  0x1f   : > { %s165_s21 = sshll.u32 %s889_s15, 4  ;;  %s545_s22 = sadd.s32 4294967295, %s882_s18  ;;  %s166_s21 = int_to_ptr.vmem [resolvable:$true] %s165_s21 }
  0x20   : > { %p582_p3 = pneg %p997_p8  ;;  %s546_s23 = sadd.s32 4294967295, %s1102_s20 }
  0x21   : > { %p91_p10 = scmp.gt.s32.totalorder %s545_s22, 0  ;;  %p94_p11 = scmp.gt.s32.totalorder %s546_s23, 0 }
  0x22   : > { %p583_p9 = pnand %p582_p3, %p81_p0  ;;  %s99_s24 = sadd.s32 1, %s866_s14 }
  0x23   : > { %s1104_s22 = smov (!%p91_p10, %s545_s22), 0  ;;  %p106_p12 = scmp.ne.s32.totalorder %s866_s14, %s862_s13 }
  0x24   : > { %585 = dma.hbm_to_vmem [thread:$0]  (!%p583_p9), %s164_s12, 128, %s166_s21, [#allocation6]  }
  0x25   : > { %s199_s25 = sand.u32 1, %s866_s14   ;;  %s1106_s23 = smov (!%p94_p11, %s546_s23), 0 }
  0x26   : > { %p108_p13 = por %p106_p12, %p75_p2  ;;  %s552_s26 = sshll.u32 %s199_s25, 3 }
  0x27   : > { %s96_s28 = ssub.s32 %s1104_s22, %s1106_s23  ;;  %s554_s29 = sshll.u32 %s1104_s22, 3 }
  0x28   : > { %p97_p1 = scmp.eq.s32.totalorder %s96_s28, 0  ;;  %s208_s5 = scalar_lea.hbm %s1089_s2, %s554_s29 }
  0x29   : > { %s201_s10 = scalar_lea.vmem [#allocation10], %s552_s26  ;;  %s210_s15 = sshll.u32 %s208_s5, 4  ;;  %s211_s15 = int_to_ptr.hbm [resolvable:$true] %s210_s15 }
  0x2a   : > { %s212_s11 = sshll.u32 %s201_s10, 4  ;;  %p590_p4 = pnand %p594_p5, %p108_p13  ;;  %s213_s11 = int_to_ptr.vmem [resolvable:$true] %s212_s11 }
  0x2b   : > { %s1020_s12 = scalar_select %p97_p1, %s866_s14, %s99_s24  }
  0x2c   : > { %592 = dma.hbm_to_vmem [thread:$0]  (!%p590_p4), %s211_s15, 128, %s213_s11, %s968_s27  }
  0x2d   : > { %221 = sbr.rel (%p997_p8) target bundleno = 1203 (0x4b3), region = 32 }
  0x32   : > { %840 = dma.done.wait (%p81_p0), [#allocation6], 128  }
  0x33   : > { %842 = vsyncadd (%p81_p0), [#allocation6], 4294967168  ;;  %s228_s21 = sand.u32 1, %s975_s6   ;;  %s230_s22 = sand.u32 1, %s874_s16  }
  0x34   : > { %s1033_s23 = sshll.u32 %s230_s22, 3  ;;  %s229_s24 = scalar_lea.sflag [#allocation9], %s228_s21 }
  0x35   : > { %s232_s25 = scalar_lea.vmem [#allocation8], %s1033_s23 }
  0x36   : > { %844 = dma.done.wait (%p987_p7), %s229_s24, 128  }
  0x37   : > { %846 = vsyncadd (%p987_p7), %s229_s24, 4294967168  ;;  %s240_s27 = sand.u32 1, %s862_s13  }
  0x38   : > { %s1041_s9 = sshll.u32 %s240_s27, 3 }
  0x39   : > { %s242_s26 = scalar_lea.vmem [#allocation10], %s1041_s9 }
  0x3a   : > { %848 = dma.done.wait (%p993_p6), %s229_s24, 128  }
  0x3b   : > { %850 = vsyncadd (%p993_p6), %s229_s24, 4294967168  ;;  %p559_p2 = scmp.ne.s32.totalorder %s878_s17, 0 }
  0x3d   : > { %274 = sbr.rel (%p559_p2) target bundleno = 210 (0xd2), region = 48 }
  0x42   : > { %v275_v0 = vld [vmem:[#allocation5] sm:$0xff]  ;;  %vm293_vm0 = vcmask 7168   ;;  %vm295_vm1 = vcmask 0   ;;  %v890_v2 = vmov 0.0  }
  0x43   : > { %v276_v1 = vmul.f32 %v275_v0, %v275_v0  ;;  %294 = vst.msk [vmem:[#allocation3] sm:$0xff] %vm293_vm0, %v890_v2 }
  0x44   : > { %296 = vst.msk [vmem:[#allocation4] sm:$0x1] %vm295_vm1, %v890_v2 }
  0x45   : > { %277 = vadd.xlane.f32.xlu0 %v276_v1 }
  0xb8   : > { %v278_v3 = vpop.xlane.xlu0 %277 }
  0xb9   : > { %v279_v4 = vmax.f32 %v278_v3, 1e-24 }
  0xbb   : > { %673 = vrsqrt.f32 %v279_v4  ;;  %vm286_vm3 = vweird.f32 %v279_v4 }
  0xc1   : > { %v674_v5 = vpop.eup %673 }
  0xc2   : > { %v281_v6 = vmul.f32 %v674_v5, %v279_v4  ;;  %vm287_vm2 = vweird.f32 %v674_v5 }
  0xc3   : > { %vm288_vm4 = vmor %vm286_vm3, %vm287_vm2 }
  0xc4   : > { %v282_v7 = vmul.f32 %v674_v5, %v281_v6 }
  0xc6   : > { %v283_v8 = vmul.f32 0.5, %v282_v7 }
  0xc8   : > { %v284_v9 = vsub.f32 1.5, %v283_v8 }
  0xca   : > { %v285_v10 = vmul.f32 %v674_v5, %v284_v9 }
  0xcc   : > { %v289_v11 = vsel %vm288_vm4, %v674_v5, %v285_v10 }
  0xcd   : > { %v290_v12 = vmul.f32 %v289_v11, %v275_v0 }
  0xcf   : > { %v291_v13 = vmul.f32 20.0, %v290_v12 }
  0xd1   : > { %292 = vst [vmem:[#allocation2] sm:$0xff] %v291_v13 }
  0xd2 PF: > { %p560_p5 = scmp.ge.s32.totalorder %s878_s17, 1 }
  0xd4   : > { %300 = sbr.rel (%p560_p5) target bundleno = 752 (0x2f0), region = 52 }
  0xd9   : > { %v301_v14 = vld [vmem:[%s232_s25] sm:$0xff]  ;;  %vm342_vm8 = vcmask 64512   ;;  %vm347_vm9 = vcmask 7168  }
  0xda   : > { %v302_v15 = vmul.f32 %v301_v14, %v301_v14  ;;  %v317_v26 = vld [vmem:[#allocation2] sm:$0xff]  ;;  %v338_v32 = vld [vmem:[#allocation3] sm:$0xff] }
  0xdc   : > { %303 = vadd.xlane.f32.xlu0 %v302_v15 }
 0x14f   : > { %v304_v16 = vpop.xlane.xlu0 %303 }
 0x150   : > { %v305_v17 = vmax.f32 %v304_v16, 1e-24 }
 0x152   : > { %675 = vrsqrt.f32 %v305_v17  ;;  %vm312_vm6 = vweird.f32 %v305_v17 }
 0x158   : > { %v676_v18 = vpop.eup %675 }
 0x159   : > { %v307_v19 = vmul.f32 %v676_v18, %v305_v17  ;;  %vm313_vm5 = vweird.f32 %v676_v18 }
 0x15a   : > { %vm314_vm7 = vmor %vm312_vm6, %vm313_vm5 }
 0x15b   : > { %v308_v20 = vmul.f32 %v676_v18, %v307_v19 }
 0x15d   : > { %v309_v21 = vmul.f32 0.5, %v308_v20 }
 0x15f   : > { %v310_v22 = vsub.f32 1.5, %v309_v21 }
 0x161   : > { %v311_v23 = vmul.f32 %v676_v18, %v310_v22 }
 0x163   : > { %v315_v24 = vsel %vm314_vm7, %v676_v18, %v311_v23 }
 0x164   : > { %v316_v25 = vmul.f32 %v315_v24, %v301_v14 }
 0x166   : > { %333 = vmatpush.xpose.msra.mxu0 %v316_v25 }
 0x169   : > { %334 = vmatmul.f32.vlgmr.msra.gmra.mxu0 %v317_v26 }
 0x1e6   : > { %v335_v27 = vpop.f32.mrf.mxu0 }
 0x1e7   : > { %v561_v28 = vadd.f32 -20.0, %v335_v27 }
 0x1e9   : > { %v340_v29 = vmul.f32 1.442695, %v561_v28 }
 0x1eb   : > { %677 = vpow2.f32 %v340_v29 }
 0x1f1   : > { %v678_v30 = vpop.eup %677 }
 0x1f2   : > { %v343_v31 = vsel %vm342_vm8, %v678_v30, 0.0 }
 0x1f3   : > { %344 = vadd.xlane.f32.xlu0 %v343_v31 }
 0x265   : > { %352 = sbr.rel (%p559_p2) target bundleno = 752 (0x2f0), region = 56 }
 0x266   : > { %v345_v33 = vpop.xlane.xlu0 %344 }
 0x267   : > { %v346_v34 = vadd.f32 %v345_v33, %v338_v32 }
 0x269   : > { %348 = vst.msk [vmem:[#allocation3] sm:$0xff] %vm347_vm9, %v346_v34 }
 0x26a   : > { %v353_v35 = vld [vmem:[#allocation2] sm:$0xff]  ;;  %v357_v43 = vld [vmem:[#allocation4] sm:$0x1]  ;;  %vm365_vm10 = vcmask 0  }
 0x26b   : > { %v354_v36 = vmul.f32 %v353_v35, %v316_v25 }
 0x26d   : > { %355 = vadd.xlane.f32.xlu0 %v354_v36 }
 0x2e0   : > { %v356_v37 = vpop.xlane.xlu0 %355 }
 0x2e1   : > { %v358_v38 = vrot.slane %v356_v37, 4 }
 0x2e3   : > { %v359_v39 = vadd.f32 %v358_v38, %v356_v37 }
 0x2e5   : > { %v360_v40 = vrot.slane %v359_v39, 2 }
 0x2e7   : > { %v361_v41 = vadd.f32 %v360_v40, %v359_v39 }
 0x2e9   : > { %v362_v42 = vrot.slane %v361_v41, 1 }
 0x2eb   : > { %v363_v44 = vadd.f32 %v362_v42, %v361_v41 }
 0x2ed   : > { %v364_v45 = vadd.f32 %v363_v44, %v357_v43 }
 0x2ef   : > { %366 = vst.msk [vmem:[#allocation4] sm:$0x1] %vm365_vm10, %v364_v45 }
 0x2f0 PF: > { %p563_p0 = scmp.lt.s32.totalorder %s878_s17, 1 }
 0x2f2   : > { %370 = sbr.rel (%p563_p0) target bundleno = 1160 (0x488), region = 60 }
 0x2f7   : > { %v371_v46 = vld [vmem:[%s242_s26] sm:$0xff]  ;;  %v387_v58 = vld [vmem:[#allocation2] sm:$0xff]  ;;  %vm412_vm14 = vcmask 64512   ;;  %vm417_vm15 = vcmask 7168  }
 0x2f8   : > { %v372_v47 = vmul.f32 %v371_v46, %v371_v46  ;;  %v408_v0 = vld [vmem:[#allocation3] sm:$0xff] }
 0x2fa   : > { %373 = vadd.xlane.f32.xlu0 %v372_v47 }
 0x36d   : > { %v374_v48 = vpop.xlane.xlu0 %373 }
 0x36e   : > { %v375_v49 = vmax.f32 %v374_v48, 1e-24 }
 0x370   : > { %679 = vrsqrt.f32 %v375_v49  ;;  %vm382_vm12 = vweird.f32 %v375_v49 }
 0x376   : > { %v680_v50 = vpop.eup %679 }
 0x377   : > { %v377_v51 = vmul.f32 %v680_v50, %v375_v49  ;;  %vm383_vm11 = vweird.f32 %v680_v50 }
 0x378   : > { %vm384_vm13 = vmor %vm382_vm12, %vm383_vm11 }
 0x379   : > { %v378_v52 = vmul.f32 %v680_v50, %v377_v51 }
 0x37b   : > { %v379_v53 = vmul.f32 0.5, %v378_v52 }
 0x37d   : > { %v380_v54 = vsub.f32 1.5, %v379_v53 }
 0x37f   : > { %v381_v55 = vmul.f32 %v680_v50, %v380_v54 }
 0x381   : > { %v385_v56 = vsel %vm384_vm13, %v680_v50, %v381_v55 }
 0x382   : > { %v386_v57 = vmul.f32 %v385_v56, %v371_v46 }
 0x384   : > { %403 = vmatpush.xpose.msra.mxu0 %v386_v57 }
 0x387   : > { %404 = vmatmul.f32.vlgmr.msra.gmra.mxu0 %v387_v58 }
 0x404   : > { %v405_v59 = vpop.f32.mrf.mxu0 }
 0x405   : > { %v564_v60 = vadd.f32 -20.0, %v405_v59 }
 0x407   : > { %v410_v61 = vmul.f32 1.442695, %v564_v60 }
 0x409   : > { %681 = vpow2.f32 %v410_v61 }
 0x40f   : > { %v682_v62 = vpop.eup %681 }
 0x410   : > { %v413_v63 = vsel %vm412_vm14, %v682_v62, 0.0 }
 0x411   : > { %414 = vadd.xlane.f32.xlu0 %v413_v63 }
 0x484   : > { %v415_v1 = vpop.xlane.xlu0 %414 }
 0x485   : > { %v416_v2 = vadd.f32 %v415_v1, %v408_v0 }
 0x487   : > { %418 = vst.msk [vmem:[#allocation3] sm:$0xff] %vm417_vm15, %v416_v2 }
 0x488 PF: > { %p565_p7 = scmp.ne.s32.totalorder %s878_s17, 2 }
 0x48a   : > { %422 = sbr.rel (%p565_p7) target bundleno = 1197 (0x4ad), region = 64 }
 0x48f   : > { %v423_v3 = vld [vmem:[#allocation3] sm:$0xff]  ;;  %vm427_vm0 = vcmask 7168   ;;  %v435_v13 = vld [vmem:[#allocation4] sm:$0x1]  ;;  %vm438_vm1 = vcmask 0  }
 0x490   : > { %683 = vlog2.f32 %v423_v3 }
 0x496   : > { %v684_v4 = vpop.eup %683 }
 0x497   : > { %v425_v5 = vmul.f32 0.6931472, %v684_v4 }
 0x499   : > { %v426_v6 = vadd.f32 20.0, %v425_v5 }
 0x49b   : > { %v428_v7 = vsel %vm427_vm0, %v426_v6, 0.0 }
 0x49c   : > { %v429_v8 = vrot.slane %v428_v7, 4 }
 0x49e   : > { %v430_v9 = vadd.f32 %v429_v8, %v428_v7 }
 0x4a0   : > { %v431_v10 = vrot.slane %v430_v9, 2 }
 0x4a2   : > { %v432_v11 = vadd.f32 %v431_v10, %v430_v9 }
 0x4a4   : > { %v433_v12 = vrot.slane %v432_v11, 1 }
 0x4a6   : > { %v434_v14 = vadd.f32 %v433_v12, %v432_v11 }
 0x4a8   : > { %v436_v15 = vsub.f32 %v434_v14, %v435_v13 }
 0x4aa   : > { %v437_v16 = vmul.f32 0.125, %v436_v15 }
 0x4ac   : > { %439 = vst.msk [vmem:[#allocation11] sm:$0x1] %vm438_vm1, %v437_v16 }
 0x4ad PF: > { %p596_p6 = scmp.eq.s32.totalorder %s975_s6, 2  ;;  %s449_s8 = sshll.u32 %s1090_s3, 4  ;;  %s450_s8 = int_to_ptr.hbm [resolvable:$true] %s449_s8 }
 0x4ae   : > { %s891_s28 = smov [#allocation11]  }
 0x4af   : > { %s447_s29 = sshll.u32 %s891_s28, 4  ;;  %s448_s29 = int_to_ptr.vmem [resolvable:$true] %s447_s29 }
 0x4b0   : > { %579 = dma.vmem_to_hbm [thread:$0]  (%p596_p6), %s448_s29, 16, %s450_s8, [#allocation7]  }
 0x4b1   : > { %852 = dma.done.wait (%p596_p6), [#allocation7], 16  }
 0x4b2   : > { %854 = vsyncadd (%p596_p6), [#allocation7], 4294967280 }
 0x4b3 PF: > { %s18_s19 = sadd.s32 1, %s886_s19   ;;  %s1094_s30 = smov %s1020_s12 }
 0x4b4   : > { %p15_p8 = scmp.ge.s32.totalorder %s18_s19, 5   ;;  %s1095_s12 = smov %s862_s13 }
 0x4b5   : > { %s1096_s13 = smov %s866_s14  ;;  %s1097_s14 = smov %s1094_s30 }
 0x4b6   : > { %s1098_s15 = smov %s874_s16  ;;  %s1077_s16 = smov 0  }
 0x4b7   : > { %s1099_s17 = smov %s882_s18  ;;  %s1100_s18 = smov %s1102_s20 }
 0x4b8   :  { %17 = sbr.rel (!%p15_p8) target bundleno = 7 (0x7), region = 107 }
 0x4bd   :  { %463 = vsyncpa [#allocation6], 1 }
 0x4be   :  { %465 = vsyncpa [#allocation6 + $0x1], 1 }
 0x4bf   :  { %466 = vsyncpa [#allocation9], 1 }
 0x4c0   :  { %468 = vsyncpa [#allocation9 + $0x1], 1 }
 0x4c1   :  { %469 = vsyncpa [#allocation7], 1 }
 0x4c2   :  { %471 = vsyncpa [#allocation7 + $0x1], 1 }

</bundles_post_ra>
